<compile_context>
chip_gen: v7x
topology: tpu7x:2x2x1
jax: 0.10.0
libtpu: 0.0.40
codegen_flags: <defaults>
</compile_context>

<pallas_src>
import jax
import jax.numpy as jnp
from jax.experimental import pallas as pl
from jax.experimental.pallas import tpu as pltpu

INPUT_NEURONS = 16
NEURONS_PER_LAYER = 64
OUTPUT_NEURONS = 1
HIDDEN_LAYERS = 2

LANE = 128      # padded hidden width (sublane dim of the transposed activations)
OUT_ROWS = 8    # padded output rows (f32 sublane granularity); row 0 is real
BATCH = 300     # example batch (any B works; padded to the batch tile)


def mlp_kernel(xT_ref, w0_ref, w1_ref, w2_ref, w3_ref, b_ref, o_ref):
    # All activations are [*, T] with the batch tile T in the lane dimension.
    xT = xT_ref[...]                                            # [16, T] bf16

    # Layer 0: ReLU(W0^T @ x^T + b0) -> [128, T]  (rows 64..127 stay zero)
    h = jnp.dot(w0_ref[...], xT, preferred_element_type=jnp.float32)
    h = jnp.maximum(h + b_ref[:, 0:1], 0.0).astype(jnp.bfloat16)

    # Hidden layer 1: Linear + ReLU (+ Dropout == identity in eval)
    h = jnp.dot(w1_ref[...], h, preferred_element_type=jnp.float32)
    h = jnp.maximum(h + b_ref[:, 1:2], 0.0).astype(jnp.bfloat16)

    # Hidden layer 2: Linear + ReLU (+ Dropout == identity in eval)
    h = jnp.dot(w2_ref[...], h, preferred_element_type=jnp.float32)
    h = jnp.maximum(h + b_ref[:, 2:3], 0.0).astype(jnp.bfloat16)

    # Output layer: [8, 128] @ [128, T] -> [8, T]; only row 0 is real output.
    out = jnp.dot(w3_ref[...], h, preferred_element_type=jnp.float32)
    o_ref[...] = (out + b_ref[0:OUT_ROWS, 3:4]).astype(o_ref.dtype)


def init_params(key):
    """PyTorch nn.Linear default init, stored as [in, out] weights / [out] biases."""
    ks = jax.random.split(key, 8)

    def lin(kw, kb, fan_in, fan_out):
        bound = 1.0 / jnp.sqrt(fan_in)
        w = jax.random.uniform(kw, (fan_in, fan_out), jnp.float32, -bound, bound)
        b = jax.random.uniform(kb, (fan_out,), jnp.float32, -bound, bound)
        return w, b

    w0, b0 = lin(ks[0], ks[1], INPUT_NEURONS, NEURONS_PER_LAYER)
    w1, b1 = lin(ks[2], ks[3], NEURONS_PER_LAYER, NEURONS_PER_LAYER)
    w2, b2 = lin(ks[4], ks[5], NEURONS_PER_LAYER, NEURONS_PER_LAYER)
    w3, b3 = lin(ks[6], ks[7], NEURONS_PER_LAYER, OUTPUT_NEURONS)
    return dict(w0=w0, b0=b0, w1=w1, b1=b1, w2=w2, b2=b2, w3=w3, b3=b3)


def pack_params(p):
    """Transpose to [out, in], zero-pad to the lane-dense on-chip layout, cast
    weights to bf16.  Padded rows/cols/biases are zero and ReLU(0)=0, so the
    padded network matches the logical 64/1-wide model exactly (up to bf16
    input/weight rounding)."""

    def padT(w, rows, cols):
        wT = w.T
        buf = jnp.zeros((rows, cols), jnp.float32)
        buf = buf.at[: wT.shape[0], : wT.shape[1]].set(wT)
        return buf.astype(jnp.bfloat16)

    b = jnp.zeros((LANE, 8), jnp.float32)          # column j = layer j's bias
    b = b.at[:NEURONS_PER_LAYER, 0].set(p["b0"])
    b = b.at[:NEURONS_PER_LAYER, 1].set(p["b1"])
    b = b.at[:NEURONS_PER_LAYER, 2].set(p["b2"])
    b = b.at[:OUTPUT_NEURONS, 3].set(p["b3"])

    return dict(
        w0T=padT(p["w0"], LANE, INPUT_NEURONS),
        w1T=padT(p["w1"], LANE, LANE),
        w2T=padT(p["w2"], LANE, LANE),
        w3T=padT(p["w3"], OUT_ROWS, LANE),
        b=b,
    )


def _pick_batch_tile(batch):
    # Keep at least 2 grid steps (v7x megacore split + i+1 input prefetch);
    # grow the tile for large batches so single-TC chips (v5e/v6e) only pay a
    # handful of ~0.35us per-step overheads.  VMEM stays tiny either way
    # (a 2048-wide bf16 x-tile is 64 KiB; all weights ~74 KiB per copy).
    tile = 128
    while tile < 2048 and (batch + 2 * tile - 1) // (2 * tile) >= 4:
        tile *= 2
    return tile


@jax.jit
def net_forward(x, pp):
    """x: any leading shape collapsing to [-1, INPUT_NEURONS] (mirrors
    x.view(-1, input_neurons)).  Returns [B, OUTPUT_NEURONS] float32."""
    x = x.reshape(-1, INPUT_NEURONS).astype(jnp.float32)
    B = x.shape[0]

    tile = _pick_batch_tile(B)
    B_pad = ((B + tile - 1) // tile) * tile

    # Batch in the lane dimension: [16, B_pad] bf16, lane-dense loads.
    xT = x.T.astype(jnp.bfloat16)
    if B_pad != B:
        xT = jnp.pad(xT, ((0, 0), (0, B_pad - B)))

    grid = (B_pad // tile,)

    def rep(shape):
        # Tiny replicated parameter: constant index_map -> fetched once, no
        # per-step re-DMA.  (Single-buffering via pl.Buffered(1) would save a
        # further ~74 KiB of VMEM; skipped as negligible at these sizes.)
        return pl.BlockSpec(shape, lambda i: (0, 0))

    outT = pl.pallas_call(
        mlp_kernel,
        out_shape=jax.ShapeDtypeStruct((OUT_ROWS, B_pad), jnp.float32),
        grid=grid,
        in_specs=[
            pl.BlockSpec((INPUT_NEURONS, tile), lambda i: (0, i)),  # x^T tile
            rep((LANE, INPUT_NEURONS)),                             # W0^T
            rep((LANE, LANE)),                                      # W1^T
            rep((LANE, LANE)),                                      # W2^T
            rep((OUT_ROWS, LANE)),                                  # W3^T
            rep((LANE, 8)),                                         # fused biases
        ],
        out_specs=pl.BlockSpec((OUT_ROWS, tile), lambda i: (0, i)),  # lane-dense
        compiler_params=pltpu.CompilerParams(
            dimension_semantics=("parallel",)),
    )(xT, pp["w0T"], pp["w1T"], pp["w2T"], pp["w3T"], pp["b"])

    # Row 0 holds the real output; this slice fuses under jit (no full re-read).
    return outT[0, :B].reshape(B, OUTPUT_NEURONS)


def reference_forward(x, p, emulate_bf16=False):
    """Pure-JAX reference.  With emulate_bf16=True it uses the same
    bf16-inputs / f32-accumulate math as the kernel (tight comparison)."""
    cast = (lambda v: v.astype(jnp.bfloat16)) if emulate_bf16 else (lambda v: v)
    h = x.reshape(-1, INPUT_NEURONS).astype(jnp.float32)
    for wk, bk in (("w0", "b0"), ("w1", "b1"), ("w2", "b2")):
        h = jnp.dot(cast(h), cast(p[wk]), preferred_element_type=jnp.float32) + p[bk]
        h = jnp.maximum(h, 0.0)
    return jnp.dot(cast(h), cast(p["w3"]), preferred_element_type=jnp.float32) + p["b3"]


if __name__ == "__main__":
    key = jax.random.PRNGKey(0)
    kx, kp = jax.random.split(key)

    x = jax.random.normal(kx, (BATCH, INPUT_NEURONS), dtype=jnp.float32)
    params = init_params(kp)
    packed = pack_params(params)

    out = jax.block_until_ready(net_forward(x, packed))
    assert out.shape == (BATCH, OUTPUT_NEURONS), out.shape

    # Tight check vs. a reference using the same bf16-in / f32-accumulate math.
    ref_bf16 = reference_forward(x, params, emulate_bf16=True)
    assert jnp.allclose(out, ref_bf16, atol=1e-3, rtol=1e-3), float(
        jnp.max(jnp.abs(out - ref_bf16)))

    # Loose sanity check vs. the pure-f32 reference (difference = bf16 rounding).
    ref_f32 = reference_forward(x, params)
    assert jnp.allclose(out, ref_f32, atol=5e-2, rtol=5e-2), float(
        jnp.max(jnp.abs(out - ref_f32)))

    print("KERNEL_OK")
</pallas_src>

<mosaic_0001>
module attributes {stable_mosaic.version = 11 : i64} {
  func.func @mlp_kernel(%arg0: i32, %arg1: memref<16x128xbf16, #tpu.memory_space<vmem>>, %arg2: memref<128x16xbf16, #tpu.memory_space<vmem>>, %arg3: memref<128x128xbf16, #tpu.memory_space<vmem>>, %arg4: memref<128x128xbf16, #tpu.memory_space<vmem>>, %arg5: memref<8x128xbf16, #tpu.memory_space<vmem>>, %arg6: memref<128x8xf32, #tpu.memory_space<vmem>>, %arg7: memref<8x128xf32, #tpu.memory_space<vmem>>) attributes {dimension_semantics = [#tpu.dimension_semantics<parallel>], iteration_bounds = array<i64: 3>, scalar_prefetch = 0 : i64, scratch_operands = 0 : i64, tpu.core_type = #tpu.core_type<tc>, window_params = [{transform_indices = @transform_0, window_bounds = array<i64: 16, 128>}, {pipeline_mode = #tpu.pipeline_mode<synchronous>, transform_indices = @transform_1, window_bounds = array<i64: 128, 16>}, {pipeline_mode = #tpu.pipeline_mode<synchronous>, transform_indices = @transform_2, window_bounds = array<i64: 128, 128>}, {pipeline_mode = #tpu.pipeline_mode<synchronous>, transform_indices = @transform_3, window_bounds = array<i64: 128, 128>}, {pipeline_mode = #tpu.pipeline_mode<synchronous>, transform_indices = @transform_4, window_bounds = array<i64: 8, 128>}, {pipeline_mode = #tpu.pipeline_mode<synchronous>, transform_indices = @transform_5, window_bounds = array<i64: 128, 8>}, {transform_indices = @transform_6, window_bounds = array<i64: 8, 128>}]} {
    %c0 = arith.constant 0 : index
    %c0_0 = arith.constant 0 : index
    %0 = vector.load %arg1[%c0, %c0_0] : memref<16x128xbf16, #tpu.memory_space<vmem>>, vector<16x128xbf16>
    %c0_1 = arith.constant 0 : index
    %c0_2 = arith.constant 0 : index
    %1 = vector.load %arg2[%c0_1, %c0_2] : memref<128x16xbf16, #tpu.memory_space<vmem>>, vector<128x16xbf16>
    %cst = arith.constant dense<0.000000e+00> : vector<128x128xf32>
    %2 = tpu.matmul %1, %0, %cst {dimension_numbers = #tpu.dot_dimension_numbers<[1], [0], [0], [1], [0, 0, 1, 1], [], []>} : vector<128x16xbf16>, vector<16x128xbf16>, vector<128x128xf32> -> vector<128x128xf32>
    %c0_3 = arith.constant 0 : index
    %c0_4 = arith.constant 0 : index
    %3 = vector.load %arg6[%c0_3, %c0_4] : memref<128x8xf32, #tpu.memory_space<vmem>>, vector<128x1xf32>
    %4 = vector.broadcast %3 : vector<128x1xf32> to vector<128x128xf32>
    %5 = arith.addf %2, %4 : vector<128x128xf32>
    %cst_5 = arith.constant 0.000000e+00 : f32
    %6 = vector.broadcast %cst_5 : f32 to vector<128x128xf32>
    %7 = arith.maximumf %5, %6 : vector<128x128xf32>
    %8 = arith.truncf %7 : vector<128x128xf32> to vector<128x128xbf16>
    %c0_6 = arith.constant 0 : index
    %c0_7 = arith.constant 0 : index
    %9 = vector.load %arg3[%c0_6, %c0_7] : memref<128x128xbf16, #tpu.memory_space<vmem>>, vector<128x128xbf16>
    %cst_8 = arith.constant dense<0.000000e+00> : vector<128x128xf32>
    %10 = tpu.matmul %9, %8, %cst_8 {dimension_numbers = #tpu.dot_dimension_numbers<[1], [0], [0], [1], [0, 0, 1, 1], [], []>} : vector<128x128xbf16>, vector<128x128xbf16>, vector<128x128xf32> -> vector<128x128xf32>
    %c0_9 = arith.constant 0 : index
    %c1 = arith.constant 1 : index
    %11 = vector.load %arg6[%c0_9, %c1] : memref<128x8xf32, #tpu.memory_space<vmem>>, vector<128x1xf32>
    %12 = vector.broadcast %11 : vector<128x1xf32> to vector<128x128xf32>
    %13 = arith.addf %10, %12 : vector<128x128xf32>
    %cst_10 = arith.constant 0.000000e+00 : f32
    %14 = vector.broadcast %cst_10 : f32 to vector<128x128xf32>
    %15 = arith.maximumf %13, %14 : vector<128x128xf32>
    %16 = arith.truncf %15 : vector<128x128xf32> to vector<128x128xbf16>
    %c0_11 = arith.constant 0 : index
    %c0_12 = arith.constant 0 : index
    %17 = vector.load %arg4[%c0_11, %c0_12] : memref<128x128xbf16, #tpu.memory_space<vmem>>, vector<128x128xbf16>
    %cst_13 = arith.constant dense<0.000000e+00> : vector<128x128xf32>
    %18 = tpu.matmul %17, %16, %cst_13 {dimension_numbers = #tpu.dot_dimension_numbers<[1], [0], [0], [1], [0, 0, 1, 1], [], []>} : vector<128x128xbf16>, vector<128x128xbf16>, vector<128x128xf32> -> vector<128x128xf32>
    %c0_14 = arith.constant 0 : index
    %c2 = arith.constant 2 : index
    %19 = vector.load %arg6[%c0_14, %c2] : memref<128x8xf32, #tpu.memory_space<vmem>>, vector<128x1xf32>
    %20 = vector.broadcast %19 : vector<128x1xf32> to vector<128x128xf32>
    %21 = arith.addf %18, %20 : vector<128x128xf32>
    %cst_15 = arith.constant 0.000000e+00 : f32
    %22 = vector.broadcast %cst_15 : f32 to vector<128x128xf32>
    %23 = arith.maximumf %21, %22 : vector<128x128xf32>
    %24 = arith.truncf %23 : vector<128x128xf32> to vector<128x128xbf16>
    %c0_16 = arith.constant 0 : index
    %c0_17 = arith.constant 0 : index
    %25 = vector.load %arg5[%c0_16, %c0_17] : memref<8x128xbf16, #tpu.memory_space<vmem>>, vector<8x128xbf16>
    %cst_18 = arith.constant dense<0.000000e+00> : vector<8x128xf32>
    %26 = tpu.matmul %25, %24, %cst_18 {dimension_numbers = #tpu.dot_dimension_numbers<[1], [0], [0], [1], [0, 0, 1, 1], [], []>} : vector<8x128xbf16>, vector<128x128xbf16>, vector<8x128xf32> -> vector<8x128xf32>
    %c0_19 = arith.constant 0 : index
    %c3 = arith.constant 3 : index
    %27 = vector.load %arg6[%c0_19, %c3] : memref<128x8xf32, #tpu.memory_space<vmem>>, vector<8x1xf32>
    %28 = vector.broadcast %27 : vector<8x1xf32> to vector<8x128xf32>
    %29 = arith.addf %26, %28 : vector<8x128xf32>
    %c0_20 = arith.constant 0 : index
    %c0_21 = arith.constant 0 : index
    %30 = vector.load %arg7[%c0_20, %c0_21] : memref<8x128xf32, #tpu.memory_space<vmem>>, vector<8x128xf32>
    tpu.vector_store %arg7[%c0_20, %c0_21], %29 {strides = array<i32>} : memref<8x128xf32, #tpu.memory_space<vmem>>, vector<8x128xf32>,
    return
  }
  func.func @transform_0(%arg0: i32) -> (i32, i32) {
    %c0_i32 = arith.constant 0 : i32
    %c0_i32_0 = arith.constant 0 : i32
    return %c0_i32, %arg0 : i32, i32
  }
  func.func @transform_1(%arg0: i32) -> (i32, i32) {
    %c0_i32 = arith.constant 0 : i32
    %c0_i32_0 = arith.constant 0 : i32
    %c0_i32_1 = arith.constant 0 : i32
    return %c0_i32, %c0_i32_0 : i32, i32
  }
  func.func @transform_2(%arg0: i32) -> (i32, i32) {
    %c0_i32 = arith.constant 0 : i32
    %c0_i32_0 = arith.constant 0 : i32
    %c0_i32_1 = arith.constant 0 : i32
    return %c0_i32, %c0_i32_0 : i32, i32
  }
  func.func @transform_3(%arg0: i32) -> (i32, i32) {
    %c0_i32 = arith.constant 0 : i32
    %c0_i32_0 = arith.constant 0 : i32
    %c0_i32_1 = arith.constant 0 : i32
    return %c0_i32, %c0_i32_0 : i32, i32
  }
  func.func @transform_4(%arg0: i32) -> (i32, i32) {
    %c0_i32 = arith.constant 0 : i32
    %c0_i32_0 = arith.constant 0 : i32
    %c0_i32_1 = arith.constant 0 : i32
    return %c0_i32, %c0_i32_0 : i32, i32
  }
  func.func @transform_5(%arg0: i32) -> (i32, i32) {
    %c0_i32 = arith.constant 0 : i32
    %c0_i32_0 = arith.constant 0 : i32
    %c0_i32_1 = arith.constant 0 : i32
    return %c0_i32, %c0_i32_0 : i32, i32
  }
  func.func @transform_6(%arg0: i32) -> (i32, i32) {
    %c0_i32 = arith.constant 0 : i32
    %c0_i32_0 = arith.constant 0 : i32
    return %c0_i32, %arg0 : i32, i32
  }
}

</mosaic_0001>

<bundles_post_ra>
// kernel: net_forward.1
= control target key start
LH: loop header
LB: loop body
LE: loop exit
PB: predicated region body
PF: predicated region fallthrough
CT: control target
= control target key end

     0   :  { %s1530_s21 = smov 0   ;;  %s1532_s22 = smov 0   ;;  %s1805_s0 = inlined_call_operand.vmem [shape: bf16[16,384], index: 0, kind: input, shape index: {}]   ;;  %s1806_s1 = inlined_call_operand.vmem [shape: bf16[128,16], index: 1, kind: input, shape index: {}]   ;;  %s1807_s2 = inlined_call_operand.vmem [shape: bf16[128,128], index: 2, kind: input, shape index: {}]   ;;  %s1808_s3 = inlined_call_operand.vmem [shape: bf16[128,128], index: 3, kind: input, shape index: {}]   ;;  %s1809_s4 = inlined_call_operand.vmem [shape: bf16[8,128], index: 4, kind: input, shape index: {}]   ;;  %s1810_s5 = inlined_call_operand.vmem [shape: f32[128,8], index: 5, kind: input, shape index: {}]   ;;  %s1811_s6 = inlined_call_operand.vmem [shape: f32[8,384], index: 6, kind: output, shape index: {}]  }
   0x1   :  { %s1534_s23 = smov 0  }
   0x2 LB: > { %s1207_s24 = sadd.s32 4294967295, %s1487_s23   ;;  %s1547_s25 = sadd.s32 1, %s1487_s23   ;;  %s1487_s23 = sphi %s1534_s23, %s1814_s23   ;;  %s1483_s22 = sphi %s1532_s22, %s1813_s22   ;;  %s1479_s21 = sphi %s1530_s21, %s1812_s21  }
   0x3   : > { %s20_s26 = ssub.s32 %s1487_s23, %s1547_s25  ;;  %s23_s27 = sadd.s32 1, %s1483_s22 }
   0x4   : > { %p21_p0 = scmp.eq.s32.totalorder %s20_s26, 0  ;;  %p30_p1 = scmp.ne.s32.totalorder %s1483_s22, %s1479_s21 }
   0x5   : > { %p31_p2 = scmp.eq.s32.totalorder %s1487_s23, 0  ;;  %p1210_p4 = scmp.ge.s32.totalorder %s1487_s23, 3 }
   0x6   : > { %s1556_s28 = scalar_select %p21_p0, %s1483_s22, %s23_s27  }
   0x7   : > { %p32_p3 = por %p31_p2, %p30_p1  ;;  %202 = sbr.rel (%p1210_p4) target bundleno = 21 (0x15), region = 36 }
   0xe   : > { %205 = sbr.rel (!%p32_p3) target bundleno = 21 (0x15), region = 40  ;;  %s207_s29 = sand.u32 (%p32_p3), 1, %s1483_s22  }
   0xf   : > { %s1212_s30 = sshll.u32 (%p32_p3), %s1487_s23, 2  ;;  %s1211_s7 = sshll.u32 (%p32_p3), %s207_s29, 3 }
  0x10   : > { %s211_s10 = scalar_lea.vmem (%p32_p3), %s1805_s0, %s1212_s30  ;;  %s209_s11 = scalar_lea.vmem (%p32_p3), [#allocation2], %s1211_s7 }
  0x11   : > { %v227_v0 = vld [vmem:[%s211_s10] sm:$0xf] (%p32_p3)  ;;  %v229_v1 = vld [vmem:[%s211_s10 + $0xc] sm:$0xf] (%p32_p3) }
  0x12   : > { %228 = vst [vmem:[%s209_s11] sm:$0xf] (%p32_p3), %v227_v0  ;;  %230 = vst [vmem:[%s209_s11 + $0x4] sm:$0xf] (%p32_p3), %v229_v1 }
  0x15 PF: > { %p1213_p5 = scmp.ge.s32.totalorder %s1487_s23, 1  ;;  %p256_p6 = scmp.lt.s32.totalorder %s1487_s23, 4 }
  0x17   : > { %p257_p7 = pnand %p1213_p5, %p256_p6 }
  0x18   : > { %s263_s12 = sand.u32 (!%p257_p7), 1, %s1479_s21   ;;  %v1441_v2 = vld [vmem:[%s1806_s1] sm:$0xff] (!%p257_p7)   ;;  %vm456_vm0 = vcmask (!%p257_p7), 130048   ;;  %v1489_v4 = vmov (!%p257_p7), 0   ;;  %v1442_v5 = vld [vmem:[%s1806_s1 + $0x8] sm:$0xff] (!%p257_p7)   ;;  %v1443_v6 = vld [vmem:[%s1806_s1 + $0x10] sm:$0xff] (!%p257_p7)  }
  0x19   : > { %260 = sbr.rel (%p257_p7) target bundleno = 1005 (0x3ed), region = 81  ;;  %s1214_s15 = sshll.u32 (!%p257_p7), %s263_s12, 3  ;;  %1303 = vmatprep.mubr.msk.bf16.mxu0 (!%p257_p7), %vm456_vm0, %v1441_v2  ;;  %1433 = vset.pattern.permute.xlu0 (!%p257_p7), %v1489_v4  ;;  %v1581_v7 = vld [vmem:[%s1810_s5] sm:$0xff] (!%p257_p7)  ;;  %v1586_v8 = vld [vmem:[%s1810_s5 + $0x10] sm:$0xff] (!%p257_p7)  ;;  %v1594_v9 = vld [vmem:[%s1810_s5 + $0x8] sm:$0xff] (!%p257_p7)  ;;  %v1490_v29 = vmov (!%p257_p7), 1  }
  0x1a   : > { %s265_s16 = scalar_lea.vmem (!%p257_p7), [#allocation2], %s1214_s15  ;;  %1434 = vset.pattern.permute.xlu1 (!%p257_p7), %v1489_v4  ;;  %332 = vperm.xlu0 (!%p257_p7), %1433, %v1581_v7   ;;  %v1599_v10 = vld [vmem:[%s1810_s5 + $0x18] sm:$0xff] (!%p257_p7)  ;;  %v1445_v12 = vld [vmem:[%s1806_s1 + $0x20] sm:$0xff] (!%p257_p7)   ;;  %v1616_v14 = vld [vmem:[%s1810_s5 + $0x28] sm:$0xff] (!%p257_p7)  ;;  %vm1493_vm1 = vmmov (!%p257_p7), 0   ;;  %p291_p8 = scmp.lt.s32.totalorder (!%p257_p7), %s1207_s24, 2 }
  0x1b   : > { %v1440_v3 = vld [vmem:[%s265_s16] sm:$0xff] (!%p257_p7)   ;;  %342 = vperm.xlu1 (!%p257_p7), %1434, %v1586_v8   ;;  %v1623_v15 = vld [vmem:[%s1810_s5 + $0x30] sm:$0xff] (!%p257_p7)  ;;  %v1446_v17 = vld [vmem:[%s1806_s1 + $0x28] sm:$0xff] (!%p257_p7)  }
  0x1c   : > { %1301 = vmatprep.subr.bf16.mxu0 (!%p257_p7), %v1440_v3  ;;  %v1444_v11 = vld [vmem:[%s1806_s1 + $0x18] sm:$0xff] (!%p257_p7)   ;;  %v1611_v13 = vld [vmem:[%s1810_s5 + $0x20] sm:$0xff] (!%p257_p7)  ;;  %v1447_v18 = vld [vmem:[%s1806_s1 + $0x30] sm:$0xff] (!%p257_p7)  }
  0x1d   : > { %1302 = vmatpush3.bf16.msra.mxu0 (!%p257_p7), %v1440_v3  ;;  %v1630_v16 = vld [vmem:[%s1810_s5 + $0x38] sm:$0xff] (!%p257_p7)  ;;  %v1642_v19 = vld [vmem:[%s1810_s5 + $0x40] sm:$0xff] (!%p257_p7)  ;;  %v1648_v20 = vld [vmem:[%s1810_s5 + $0x48] sm:$0xff] (!%p257_p7) }
  0x1e   : > { %337 = vperm.xlu0 (!%p257_p7), %1433, %v1594_v9   ;;  %v1658_v21 = vld [vmem:[%s1810_s5 + $0x50] sm:$0xff] (!%p257_p7)  ;;  %v1663_v22 = vld [vmem:[%s1810_s5 + $0x58] sm:$0xff] (!%p257_p7)  ;;  %v1673_v24 = vld [vmem:[%s1810_s5 + $0x60] sm:$0xff] (!%p257_p7) }
  0x1f   : > { %347 = vperm.xlu1 (!%p257_p7), %1434, %v1599_v10   ;;  %v1448_v23 = vld [vmem:[%s1806_s1 + $0x38] sm:$0xff] (!%p257_p7)   ;;  %v1678_v25 = vld [vmem:[%s1810_s5 + $0x68] sm:$0xff] (!%p257_p7)  ;;  %v1686_v26 = vld [vmem:[%s1810_s5 + $0x70] sm:$0xff] (!%p257_p7) }
  0x20   : > { %1304 = vmatmul.mubr.msk.bf16.vlgmr.msra.gmra.mrb[0].mxu0 %vm456_vm0, %v1442_v5  ;;  %v1691_v27 = vld [vmem:[%s1810_s5 + $0x78] sm:$0xff]  ;;  %v1449_v28 = vld [vmem:[%s1807_s2] sm:$0xff]   ;;  %s1816_s24 = smov (!%p291_p8, %s1207_s24), 2 }
  0x21   : > { %1307 = vmatprep.mubr.msk.bf16.mxu0 %vm456_vm0, %v1443_v6  ;;  %1335 = vmatprep.mubr.bf16.mxu1 %v1449_v28  ;;  %s1215_s21 = sshll.u32 %s1816_s24, 3 }
  0x22   : > { %352 = vperm.xlu0 %1433, %v1611_v13   ;;  %s294_s29 = scalar_lea.vmem %s1811_s6, %s1215_s21 }
  0x23   : > { %357 = vperm.xlu1 %1434, %v1616_v14  }
  0x26   : > { %362 = vperm.xlu0 %1433, %v1623_v15  }
  0x27   : > { %367 = vperm.xlu1 %1434, %v1630_v16  }
  0x28   : > { %1308 = vmatmul.mubr.msk.bf16.gmra.mrb[4].mxu0 %vm456_vm0, %v1444_v11 }
  0x29   : > { %1311 = vmatprep.mubr.msk.bf16.mxu0 %vm456_vm0, %v1445_v12 }
  0x2a   : > { %372 = vperm.xlu0 %1433, %v1642_v19  }
  0x2b   : > { %377 = vperm.xlu1 %1434, %v1648_v20  }
  0x2e   : > { %382 = vperm.xlu0 %1433, %v1658_v21  }
  0x2f   : > { %387 = vperm.xlu1 %1434, %v1663_v22  }
  0x30   : > { %1312 = vmatmul.mubr.msk.bf16.gmra.mrb[8].mxu0 %vm456_vm0, %v1446_v17 }
  0x31   : > { %1315 = vmatprep.mubr.msk.bf16.mxu0 %vm456_vm0, %v1447_v18 }
  0x32   : > { %392 = vperm.xlu0 %1433, %v1673_v24  }
  0x33   : > { %397 = vperm.xlu1 %1434, %v1678_v25  }
  0x36   : > { %402 = vperm.xlu0 %1433, %v1686_v26  }
  0x37   : > { %407 = vperm.xlu1 %1434, %v1691_v27  }
  0x38   : > { %1316 = vmatmul.mubr.msk.bf16.gmra.mrb[12].mxu0 %vm456_vm0, %v1448_v23 }
  0x3a   : > { %1435 = vset.pattern.permute.xlu0 %v1490_v29 }
  0x3b   : > { %1436 = vset.pattern.permute.xlu1 %v1490_v29  ;;  %619 = vperm.xlu0 %1435, %v1581_v7  }
  0x3c   : > { %623 = vperm.xlu1 %1436, %v1594_v9  }
  0x3f   : > { %631 = vperm.xlu0 %1435, %v1599_v10  }
  0x40   : > { %627 = vperm.xlu1 %1436, %v1586_v8  }
  0x43   : > { %639 = vperm.xlu0 %1435, %v1616_v14  }
  0x44   : > { %635 = vperm.xlu1 %1436, %v1611_v13  }
  0x47   : > { %647 = vperm.xlu0 %1435, %v1630_v16  }
  0x48   : > { %643 = vperm.xlu1 %1436, %v1623_v15  }
  0x4b   : > { %655 = vperm.xlu0 %1435, %v1648_v20  }
  0x4c   : > { %651 = vperm.xlu1 %1436, %v1642_v19  }
  0x4f   : > { %663 = vperm.xlu0 %1435, %v1663_v22  }
  0x50   : > { %659 = vperm.xlu1 %1436, %v1658_v21  }
  0x53   : > { %671 = vperm.xlu0 %1435, %v1678_v25  }
  0x54   : > { %667 = vperm.xlu1 %1436, %v1673_v24  }
  0x57   : > { %679 = vperm.xlu0 %1435, %v1691_v27  }
  0x58   : > { %675 = vperm.xlu1 %1436, %v1686_v26  }
  0x99   : > { %v333_v30 = vpop.permute.xlu0 %332 }
  0x9a   : > { %v343_v31 = vpop.permute.xlu1 %342 }
  0x9d   : > { %v338_v32 = vpop.permute.xlu0 %337 }
  0x9e   : > { %v348_v33 = vpop.permute.xlu1 %347 }
  0xa1   : > { %v353_v34 = vpop.permute.xlu0 %352 }
  0xa2   : > { %v358_v35 = vpop.permute.xlu1 %357 }
  0xa5   : > { %v363_v36 = vpop.permute.xlu0 %362 }
  0xa6   : > { %v368_v40 = vpop.permute.xlu1 %367 }
  0xa9   : > { %v373_v48 = vpop.permute.xlu0 %372 }
  0xaa   : > { %v378_v52 = vpop.permute.xlu1 %377 }
  0xad   : > { %v383_v61 = vpop.permute.xlu0 %382 }
  0xae   : > { %v388_v1 = vpop.permute.xlu1 %387 }
  0xb1   : > { %v393_v17 = vpop.permute.xlu0 %392 }
  0xf3   : > { %v1305_v37 = vpop.f32.mrb[0].mxu0 }
  0xf4   : > { %v524_v38 = vadd.f32 %v1305_v37, %v343_v31  ;;  %v515_v39 = vpop.f32.mrb[1].mxu0  ;;  %v403_v37 = vpop.permute.xlu0 %402 }
  0xf5   : > { %v516_v41 = vadd.f32 %v515_v39, %v333_v30  ;;  %v1306_v42 = vpop.f32.mrb[2].mxu0  ;;  %v398_v30 = vpop.permute.xlu1 %397 }
  0xf6   : > { %v527_v43 = vadd.f32 %v1306_v42, %v348_v33  ;;  %v518_v44 = vpop.f32.mrb[3].mxu0  ;;  %v580_v46 = vmax.f32 %v524_v38, 0.0 }
  0xf7   : > { %v519_v45 = vadd.f32 %v518_v44, %v338_v32  ;;  %v578_v49 = vmax.f32 %v516_v41, 0.0 }
  0xf8   : > { %v581_v47 = vmax.f32 %v527_v43, 0.0 }
  0xf9   : > { %v579_v50 = vmax.f32 %v519_v45, 0.0  ;;  %v408_v42 = vpop.permute.xlu1 %407 }
  0xfa   : > { %v595_v51 = vpack.c.bf16 %v581_v47, %v580_v46 }
  0xfb   : > { %v1309_v53 = vpop.f32.mrb[4].mxu0  ;;  %v594_v54 = vpack.c.bf16 %v579_v50, %v578_v49 }
  0xfc   : > { %v540_v55 = vadd.f32 %v1309_v53, %v363_v36  ;;  %v531_v56 = vpop.f32.mrb[5].mxu0 }
  0xfd   : > { %v532_v57 = vadd.f32 %v531_v56, %v353_v34  ;;  %v1310_v58 = vpop.f32.mrb[6].mxu0  ;;  %1319 = vmatprep.subr.bf16.mxu1 %v594_v54  ;;  %v1452_v56 = vld [vmem:[%s1807_s2 + $0x18] sm:$0xff]  }
  0xfe   : > { %v543_v59 = vadd.f32 %v1310_v58, %v368_v40  ;;  %v534_v60 = vpop.f32.mrb[7].mxu0  ;;  %1320 = vmatpush3.bf16.msra.mxu1 %v594_v54  ;;  %v584_v63 = vmax.f32 %v540_v55, 0.0  ;;  %v1450_v54 = vld [vmem:[%s1807_s2 + $0x8] sm:$0xff]   ;;  %v1451_v55 = vld [vmem:[%s1807_s2 + $0x10] sm:$0xff]  }
  0xff   : > { %v535_v62 = vadd.f32 %v534_v60, %v358_v35  ;;  %1321 = vmatprep.subr.bf16.mxu1 %v595_v51  ;;  %v582_v2 = vmax.f32 %v532_v57, 0.0  ;;  %v1453_v57 = vld [vmem:[%s1807_s2 + $0x20] sm:$0xff]   ;;  %v1454_v58 = vld [vmem:[%s1807_s2 + $0x28] sm:$0xff]   ;;  %v1456_v60 = vld [vmem:[%s1807_s2 + $0x38] sm:$0xff]  }
 0x100   : > { %v585_v0 = vmax.f32 %v543_v59, 0.0  ;;  %v1455_v59 = vld [vmem:[%s1807_s2 + $0x30] sm:$0xff]  }
 0x101   : > { %v583_v3 = vmax.f32 %v535_v62, 0.0  ;;  %v1491_v62 = vmov 2  }
 0x102   : > { %v597_v4 = vpack.c.bf16 %v585_v0, %v584_v63  ;;  %1322 = vmatpush3.bf16.msra.mxu1 %v595_v51  ;;  %1437 = vset.pattern.permute.xlu1 %v1491_v62 }
 0x103   : > { %v596_v5 = vpack.c.bf16 %v583_v3, %v582_v2  ;;  %v1313_v6 = vpop.f32.mrb[8].mxu0  ;;  %1438 = vset.pattern.permute.xlu0 %v1491_v62  ;;  %868 = vperm.xlu1 %1437, %v1581_v7  }
 0x104   : > { %v556_v11 = vadd.f32 %v1313_v6, %v383_v61  ;;  %v547_v12 = vpop.f32.mrb[9].mxu0  ;;  %v1457_v61 = vld [vmem:[%s1808_s3] sm:$0xff]   ;;  %872 = vperm.xlu0 %1438, %v1594_v9   ;;  %v620_v9 = vpop.permute.xlu0 %619 }
 0x105   : > { %v548_v18 = vadd.f32 %v547_v12, %v373_v48  ;;  %v1314_v23 = vpop.f32.mrb[10].mxu0  ;;  %1323 = vmatprep.subr.bf16.mxu1 %v596_v5  ;;  %1367 = vmatprep.mubr.bf16.mxu0 %v1457_v61 }
 0x106   : > { %v559_v28 = vadd.f32 %v1314_v23, %v388_v1  ;;  %v550_v29 = vpop.f32.mrb[11].mxu0  ;;  %1324 = vmatpush3.bf16.msra.mxu1 %v596_v5  ;;  %v588_v32 = vmax.f32 %v556_v11, 0.0 }
 0x107   : > { %v551_v31 = vadd.f32 %v550_v29, %v378_v52  ;;  %1325 = vmatprep.subr.bf16.mxu1 %v597_v4  ;;  %v586_v34 = vmax.f32 %v548_v18, 0.0  ;;  %876 = vperm.xlu1 %1437, %v1586_v8   ;;  %v624_v8 = vpop.permute.xlu1 %623 }
 0x108   : > { %v589_v33 = vmax.f32 %v559_v28, 0.0  ;;  %884 = vperm.xlu0 %1438, %v1611_v13   ;;  %v632_v13 = vpop.permute.xlu0 %631 }
 0x109   : > { %v587_v35 = vmax.f32 %v551_v31, 0.0 }
 0x10a   : > { %v599_v36 = vpack.c.bf16 %v589_v33, %v588_v32  ;;  %1326 = vmatpush3.bf16.msra.mxu1 %v597_v4 }
 0x10b   : > { %v598_v38 = vpack.c.bf16 %v587_v35, %v586_v34  ;;  %v1317_v39 = vpop.f32.mrb[12].mxu0  ;;  %880 = vperm.xlu1 %1437, %v1599_v10   ;;  %v628_v10 = vpop.permute.xlu1 %627 }
 0x10c   : > { %v572_v40 = vadd.f32 %v1317_v39, %v403_v37  ;;  %v563_v41 = vpop.f32.mrb[13].mxu0  ;;  %892 = vperm.xlu0 %1438, %v1623_v15   ;;  %v640_v15 = vpop.permute.xlu0 %639 }
 0x10d   : > { %v564_v43 = vadd.f32 %v563_v41, %v393_v17  ;;  %v1318_v44 = vpop.f32.mrb[14].mxu0  ;;  %1327 = vmatprep.subr.bf16.mxu1 %v598_v38 }
 0x10e   : > { %v575_v45 = vadd.f32 %v1318_v44, %v408_v42  ;;  %v566_v46 = vpop.f32.mrb[15].mxu0  ;;  %1328 = vmatpush3.bf16.msra.mxu1 %v598_v38  ;;  %v592_v48 = vmax.f32 %v572_v40, 0.0 }
 0x10f   : > { %v567_v47 = vadd.f32 %v566_v46, %v398_v30  ;;  %1329 = vmatprep.subr.bf16.mxu1 %v599_v36  ;;  %v590_v50 = vmax.f32 %v564_v43, 0.0  ;;  %888 = vperm.xlu1 %1437, %v1616_v14   ;;  %v636_v14 = vpop.permute.xlu1 %635 }
 0x110   : > { %v593_v49 = vmax.f32 %v575_v45, 0.0  ;;  %900 = vperm.xlu0 %1438, %v1642_v19   ;;  %v648_v63 = vpop.permute.xlu0 %647 }
 0x111   : > { %v591_v51 = vmax.f32 %v567_v47, 0.0 }
 0x112   : > { %v601_v52 = vpack.c.bf16 %v593_v49, %v592_v48  ;;  %1330 = vmatpush3.bf16.msra.mxu1 %v599_v36 }
 0x113   : > { %v600_v53 = vpack.c.bf16 %v591_v51, %v590_v50  ;;  %896 = vperm.xlu1 %1437, %v1630_v16   ;;  %v644_v16 = vpop.permute.xlu1 %643 }
 0x114   : > { %908 = vperm.xlu0 %1438, %v1658_v21   ;;  %v656_v6 = vpop.permute.xlu0 %655 }
 0x115   : > { %1331 = vmatprep.subr.bf16.mxu1 %v600_v53 }
 0x116   : > { %1332 = vmatpush3.bf16.msra.mxu1 %v600_v53 }
 0x117   : > { %1333 = vmatprep.subr.bf16.mxu1 %v601_v52  ;;  %904 = vperm.xlu1 %1437, %v1648_v20   ;;  %v652_v3 = vpop.permute.xlu1 %651 }
 0x118   : > { %916 = vperm.xlu0 %1438, %v1673_v24   ;;  %v664_v35 = vpop.permute.xlu0 %663 }
 0x11a   : > { %1334 = vmatpush3.bf16.msra.mxu1 %v601_v52 }
 0x11b   : > { %912 = vperm.xlu1 %1437, %v1663_v22   ;;  %v660_v31 = vpop.permute.xlu1 %659 }
 0x11c   : > { %924 = vperm.xlu0 %1438, %v1686_v26   ;;  %v672_v48 = vpop.permute.xlu0 %671 }
 0x11d   : > { %1336 = vmatmul.mubr.bf16.vlgmr.msra.gmra.mrb[0].mxu1 %v1450_v54 }
 0x11e   : > { %1339 = vmatprep.mubr.bf16.mxu1 %v1451_v55 }
 0x11f   : > { %920 = vperm.xlu1 %1437, %v1678_v25   ;;  %v668_v43 = vpop.permute.xlu1 %667 }
 0x123   : > { %928 = vperm.xlu1 %1437, %v1691_v27   ;;  %v676_v55 = vpop.permute.xlu1 %675 }
 0x125   : > { %1340 = vmatmul.mubr.bf16.gmra.mrb[4].mxu1 %v1452_v56 }
 0x126   : > { %1343 = vmatprep.mubr.bf16.mxu1 %v1453_v57 }
 0x12d   : > { %1344 = vmatmul.mubr.bf16.gmra.mrb[8].mxu1 %v1454_v58 }
 0x12e   : > { %1347 = vmatprep.mubr.bf16.mxu1 %v1455_v59 }
 0x135   : > { %1348 = vmatmul.mubr.bf16.gmra.mrb[12].mxu1 %v1456_v60  ;;  %v680_v60 = vpop.permute.xlu0 %679 }
 0x1f0   : > { %v1337_v19 = vpop.f32.mrb[0].mxu1 }
 0x1f1   : > { %v773_v21 = vadd.f32 %v1337_v19, %v628_v10  ;;  %v764_v20 = vpop.f32.mrb[1].mxu1 }
 0x1f2   : > { %v765_v24 = vadd.f32 %v764_v20, %v620_v9  ;;  %v1338_v0 = vpop.f32.mrb[2].mxu1  ;;  %v1458_v20 = vld [vmem:[%s1808_s3 + $0x8] sm:$0xff]  }
 0x1f3   : > { %v776_v22 = vadd.f32 %v1338_v0, %v632_v13  ;;  %v767_v1 = vpop.f32.mrb[3].mxu1  ;;  %v829_v2 = vmax.f32 %v773_v21, 0.0  ;;  %v1461_v0 = vld [vmem:[%s1808_s3 + $0x20] sm:$0xff]  }
 0x1f4   : > { %v768_v26 = vadd.f32 %v767_v1, %v624_v8  ;;  %v827_v27 = vmax.f32 %v765_v24, 0.0  ;;  %v1460_v24 = vld [vmem:[%s1808_s3 + $0x18] sm:$0xff]   ;;  %v1463_v1 = vld [vmem:[%s1808_s3 + $0x30] sm:$0xff]  }
 0x1f5   : > { %v830_v25 = vmax.f32 %v776_v22, 0.0  ;;  %v1462_v22 = vld [vmem:[%s1808_s3 + $0x28] sm:$0xff]  }
 0x1f6   : > { %v828_v4 = vmax.f32 %v768_v26, 0.0  ;;  %v1464_v26 = vld [vmem:[%s1808_s3 + $0x38] sm:$0xff]  }
 0x1f7   : > { %v844_v5 = vpack.c.bf16 %v830_v25, %v829_v2  ;;  %v1492_v2 = vmov 0.0   ;;  %v1494_v25 = vmov 3  }
 0x1f8   : > { %v843_v11 = vpack.c.bf16 %v828_v4, %v827_v27  ;;  %v1341_v12 = vpop.f32.mrb[4].mxu1  ;;  %1383 = vmatprep.subr.bf16.mxu1 %v1492_v2  ;;  %1399 = vmatprep.mubr.msk.bf16.mxu1 %vm1493_vm1, %v1492_v2  ;;  %v873_v4 = vpop.permute.xlu0 %872 }
 0x1f9   : > { %v789_v17 = vadd.f32 %v1341_v12, %v644_v16  ;;  %v780_v18 = vpop.f32.mrb[5].mxu1  ;;  %1439 = vset.pattern.permute.xlu0 %v1494_v25 }
 0x1fa   : > { %v781_v23 = vadd.f32 %v780_v18, %v636_v14  ;;  %v1342_v28 = vpop.f32.mrb[6].mxu1  ;;  %1351 = vmatprep.subr.bf16.mxu0 %v843_v11  ;;  %1104 = vperm.xlu0 %1439, %v1581_v7  }
 0x1fb   : > { %v792_v29 = vadd.f32 %v1342_v28, %v648_v63  ;;  %v783_v30 = vpop.f32.mrb[7].mxu1  ;;  %1352 = vmatpush3.bf16.msra.mxu0 %v843_v11  ;;  %v833_v33 = vmax.f32 %v789_v17, 0.0  ;;  %v1459_v63 = vld [vmem:[%s1808_s3 + $0x10] sm:$0xff]  }
 0x1fc   : > { %v784_v32 = vadd.f32 %v783_v30, %v640_v15  ;;  %1353 = vmatprep.subr.bf16.mxu0 %v844_v5  ;;  %v831_v36 = vmax.f32 %v781_v23, 0.0 }
 0x1fd   : > { %v834_v34 = vmax.f32 %v792_v29, 0.0 }
 0x1fe   : > { %v832_v37 = vmax.f32 %v784_v32, 0.0 }
 0x1ff   : > { %v846_v38 = vpack.c.bf16 %v834_v34, %v833_v33  ;;  %1354 = vmatpush3.bf16.msra.mxu0 %v844_v5 }
 0x200   : > { %v845_v39 = vpack.c.bf16 %v832_v37, %v831_v36  ;;  %v1345_v40 = vpop.f32.mrb[8].mxu1 }
 0x201   : > { %v805_v41 = vadd.f32 %v1345_v40, %v660_v31  ;;  %v796_v42 = vpop.f32.mrb[9].mxu1 }
 0x202   : > { %v797_v44 = vadd.f32 %v796_v42, %v652_v3  ;;  %v1346_v45 = vpop.f32.mrb[10].mxu1  ;;  %1355 = vmatprep.subr.bf16.mxu0 %v845_v39  ;;  %v869_v3 = vpop.permute.xlu1 %868 }
 0x203   : > { %v808_v46 = vadd.f32 %v1346_v45, %v664_v35  ;;  %v799_v47 = vpop.f32.mrb[11].mxu1  ;;  %1356 = vmatpush3.bf16.msra.mxu0 %v845_v39  ;;  %v837_v50 = vmax.f32 %v805_v41, 0.0 }
 0x204   : > { %v800_v49 = vadd.f32 %v799_v47, %v656_v6  ;;  %1357 = vmatprep.subr.bf16.mxu0 %v846_v38  ;;  %v835_v52 = vmax.f32 %v797_v44, 0.0  ;;  %v885_v6 = vpop.permute.xlu0 %884 }
 0x205   : > { %v838_v51 = vmax.f32 %v808_v46, 0.0 }
 0x206   : > { %v836_v53 = vmax.f32 %v800_v49, 0.0  ;;  %v877_v27 = vpop.permute.xlu1 %876 }
 0x207   : > { %v848_v54 = vpack.c.bf16 %v838_v51, %v837_v50  ;;  %1358 = vmatpush3.bf16.msra.mxu0 %v846_v38 }
 0x208   : > { %v847_v56 = vpack.c.bf16 %v836_v53, %v835_v52  ;;  %v1349_v57 = vpop.f32.mrb[12].mxu1  ;;  %v893_v12 = vpop.permute.xlu0 %892 }
 0x209   : > { %v821_v58 = vadd.f32 %v1349_v57, %v676_v55  ;;  %v812_v59 = vpop.f32.mrb[13].mxu1 }
 0x20a   : > { %v813_v61 = vadd.f32 %v812_v59, %v668_v43  ;;  %v1350_v62 = vpop.f32.mrb[14].mxu1  ;;  %1359 = vmatprep.subr.bf16.mxu0 %v847_v56  ;;  %v881_v5 = vpop.permute.xlu1 %880 }
 0x20b   : > { %v824_v8 = vadd.f32 %v1350_v62, %v680_v60  ;;  %v815_v9 = vpop.f32.mrb[15].mxu1  ;;  %1360 = vmatpush3.bf16.msra.mxu0 %v847_v56  ;;  %v841_v13 = vmax.f32 %v821_v58, 0.0 }
 0x20c   : > { %v816_v10 = vadd.f32 %v815_v9, %v672_v48  ;;  %1361 = vmatprep.subr.bf16.mxu0 %v848_v54  ;;  %v839_v15 = vmax.f32 %v813_v61, 0.0  ;;  %v901_v36 = vpop.permute.xlu0 %900 }
 0x20d   : > { %v842_v14 = vmax.f32 %v824_v8, 0.0 }
 0x20e   : > { %v840_v16 = vmax.f32 %v816_v10, 0.0  ;;  %v889_v11 = vpop.permute.xlu1 %888 }
 0x20f   : > { %v850_v19 = vpack.c.bf16 %v842_v14, %v841_v13  ;;  %1362 = vmatpush3.bf16.msra.mxu0 %v848_v54 }
 0x210   : > { %v849_v21 = vpack.c.bf16 %v840_v16, %v839_v15  ;;  %v909_v48 = vpop.permute.xlu0 %908 }
 0x212   : > { %1363 = vmatprep.subr.bf16.mxu0 %v849_v21  ;;  %v897_v28 = vpop.permute.xlu1 %896 }
 0x213   : > { %1364 = vmatpush3.bf16.msra.mxu0 %v849_v21 }
 0x214   : > { %1365 = vmatprep.subr.bf16.mxu0 %v850_v19  ;;  %v917_v60 = vpop.permute.xlu0 %916 }
 0x216   : > { %v905_v39 = vpop.permute.xlu1 %904 }
 0x217   : > { %1366 = vmatpush3.bf16.msra.mxu0 %v850_v19 }
 0x21a   : > { %1368 = vmatmul.mubr.bf16.vlgmr.msra.gmra.mrb[16].mxu0 %v1458_v20  ;;  %v913_v52 = vpop.permute.xlu1 %912  ;;  %v925_v20 = vpop.permute.xlu0 %924 }
 0x21b   : > { %1371 = vmatprep.mubr.bf16.mxu0 %v1459_v63 }
 0x21e   : > { %v921_v10 = vpop.permute.xlu1 %920 }
 0x222   : > { %1372 = vmatmul.mubr.bf16.gmra.mrb[20].mxu0 %v1460_v24 }
 0x223   : > { %1375 = vmatprep.mubr.bf16.mxu0 %v1461_v0 }
 0x22a   : > { %1376 = vmatmul.mubr.bf16.gmra.mrb[24].mxu0 %v1462_v22 }
 0x22b   : > { %1379 = vmatprep.mubr.bf16.mxu0 %v1463_v1  ;;  %v929_v1 = vpop.permute.xlu1 %928 }
 0x232   : > { %1380 = vmatmul.mubr.bf16.gmra.mrb[28].mxu0 %v1464_v26 }
 0x2ed   : > { %v1369_v17 = vpop.f32.mrb[16].mxu0 }
 0x2ee   : > { %v1022_v18 = vadd.f32 %v1369_v17, %v877_v27  ;;  %v1013_v23 = vpop.f32.mrb[17].mxu0 }
 0x2ef   : > { %v1014_v29 = vadd.f32 %v1013_v23, %v869_v3  ;;  %v1370_v30 = vpop.f32.mrb[18].mxu0  ;;  %v1100_v23 = vld [vmem:[%s1809_s4] sm:$0xf] }
 0x2f0   : > { %v1025_v31 = vadd.f32 %v1370_v30, %v881_v5  ;;  %v1016_v32 = vpop.f32.mrb[19].mxu0  ;;  %v1078_v34 = vmax.f32 %v1022_v18, 0.0 }
 0x2f1   : > { %v1017_v33 = vadd.f32 %v1016_v32, %v873_v4  ;;  %v1076_v7 = vmax.f32 %v1014_v29, 0.0 }
 0x2f2   : > { %v1079_v35 = vmax.f32 %v1025_v31, 0.0 }
 0x2f3   : > { %v1077_v37 = vmax.f32 %v1017_v33, 0.0 }
 0x2f4   : > { %v1093_v38 = vpack.c.bf16 %v1079_v35, %v1078_v34 }
 0x2f5   : > { %v1092_v40 = vpack.c.bf16 %v1077_v37, %v1076_v7  ;;  %v1373_v41 = vpop.f32.mrb[20].mxu0 }
 0x2f6   : > { %v1038_v42 = vadd.f32 %v1373_v41, %v893_v12  ;;  %v1029_v43 = vpop.f32.mrb[21].mxu0 }
 0x2f7   : > { %v1030_v44 = vadd.f32 %v1029_v43, %v885_v6  ;;  %v1374_v45 = vpop.f32.mrb[22].mxu0  ;;  %1384 = vmatpush3.bf16.msra.mxu1 %v1092_v40 }
 0x2f8   : > { %v1041_v46 = vadd.f32 %v1374_v45, %v897_v28  ;;  %v1032_v47 = vpop.f32.mrb[23].mxu0  ;;  %1385 = vmatprep.subr.bf16.mxu1 %v1492_v2  ;;  %v1082_v50 = vmax.f32 %v1038_v42, 0.0  ;;  %v1105_v28 = vpop.permute.xlu0 %1104 }
 0x2f9   : > { %v1033_v49 = vadd.f32 %v1032_v47, %v889_v11  ;;  %v1080_v53 = vmax.f32 %v1030_v44, 0.0 }
 0x2fa   : > { %v1083_v51 = vmax.f32 %v1041_v46, 0.0 }
 0x2fb   : > { %v1081_v54 = vmax.f32 %v1033_v49, 0.0  ;;  %1386 = vmatpush3.bf16.msra.mxu1 %v1093_v38 }
 0x2fc   : > { %v1095_v55 = vpack.c.bf16 %v1083_v51, %v1082_v50  ;;  %1387 = vmatprep.subr.bf16.mxu1 %v1492_v2 }
 0x2fd   : > { %v1094_v56 = vpack.c.bf16 %v1081_v54, %v1080_v53  ;;  %v1377_v57 = vpop.f32.mrb[24].mxu0 }
 0x2fe   : > { %v1054_v58 = vadd.f32 %v1377_v57, %v909_v48  ;;  %v1045_v59 = vpop.f32.mrb[25].mxu0 }
 0x2ff   : > { %v1046_v61 = vadd.f32 %v1045_v59, %v901_v36  ;;  %v1378_v62 = vpop.f32.mrb[26].mxu0  ;;  %1388 = vmatpush3.bf16.msra.mxu1 %v1094_v56 }
 0x300   : > { %v1057_v8 = vadd.f32 %v1378_v62, %v913_v52  ;;  %v1048_v9 = vpop.f32.mrb[27].mxu0  ;;  %1389 = vmatprep.subr.bf16.mxu1 %v1492_v2  ;;  %v1086_v14 = vmax.f32 %v1054_v58, 0.0 }
 0x301   : > { %v1049_v13 = vadd.f32 %v1048_v9, %v905_v39  ;;  %v1084_v16 = vmax.f32 %v1046_v61, 0.0 }
 0x302   : > { %v1087_v15 = vmax.f32 %v1057_v8, 0.0 }
 0x303   : > { %v1085_v19 = vmax.f32 %v1049_v13, 0.0  ;;  %1390 = vmatpush3.bf16.msra.mxu1 %v1095_v55 }
 0x304   : > { %v1097_v21 = vpack.c.bf16 %v1087_v15, %v1086_v14  ;;  %1391 = vmatprep.subr.bf16.mxu1 %v1492_v2 }
 0x305   : > { %v1096_v63 = vpack.c.bf16 %v1085_v19, %v1084_v16  ;;  %v1381_v24 = vpop.f32.mrb[28].mxu0 }
 0x306   : > { %v1070_v0 = vadd.f32 %v1381_v24, %v925_v20  ;;  %v1061_v22 = vpop.f32.mrb[29].mxu0 }
 0x307   : > { %v1062_v26 = vadd.f32 %v1061_v22, %v917_v60  ;;  %v1382_v25 = vpop.f32.mrb[30].mxu0  ;;  %1392 = vmatpush3.bf16.msra.mxu1 %v1096_v63 }
 0x308   : > { %v1073_v3 = vadd.f32 %v1382_v25, %v929_v1  ;;  %v1064_v27 = vpop.f32.mrb[31].mxu0  ;;  %1393 = vmatprep.subr.bf16.mxu1 %v1492_v2  ;;  %v1090_v5 = vmax.f32 %v1070_v0, 0.0 }
 0x309   : > { %v1065_v4 = vadd.f32 %v1064_v27, %v921_v10  ;;  %v1088_v11 = vmax.f32 %v1062_v26, 0.0 }
 0x30a   : > { %v1091_v6 = vmax.f32 %v1073_v3, 0.0 }
 0x30b   : > { %v1089_v12 = vmax.f32 %v1065_v4, 0.0  ;;  %1394 = vmatpush3.bf16.msra.mxu1 %v1097_v21 }
 0x30c   : > { %v1099_v17 = vpack.c.bf16 %v1091_v6, %v1090_v5  ;;  %1395 = vmatprep.subr.bf16.mxu1 %v1492_v2 }
 0x30d   : > { %v1098_v18 = vpack.c.bf16 %v1089_v12, %v1088_v11 }
 0x30f   : > { %1396 = vmatpush3.bf16.msra.mxu1 %v1098_v18 }
 0x310   : > { %1397 = vmatprep.subr.bf16.mxu1 %v1492_v2 }
 0x313   : > { %1398 = vmatpush3.bf16.msra.mxu1 %v1099_v17 }
 0x316   : > { %1400 = vmatmul.mubr.bf16.vlgmr.msra.gmra.mrb[16].mxu1 %v1100_v23 }
 0x3e9   : > { %v1141_v29 = vpop.f32.mrb[16].mxu1 }
 0x3ea   : > { %v1142_v30 = vadd.f32 %v1141_v29, %v1105_v28  ;;  %v1401_v31 = vpop.f32.mrb[17].mxu1 }
 0x3eb   : > { %v1144_v2 = vpop.f32.mrb[18].mxu1 }
 0x3ec   : > { %1147 = vst [vmem:[%s294_s29] sm:$0xff] %v1142_v30  ;;  %v1402_v32 = vpop.f32.mrb[19].mxu1 }
 0x3ed PF: > { %p13_p9 = scmp.ge.s32.totalorder %s1547_s25, 5   ;;  %s1812_s21 = smov %s1483_s22 }
 0x3ee   : > { %s1813_s22 = smov %s1556_s28  ;;  %s1814_s23 = smov %s1547_s25 }
 0x3ef   :  { %15 = sbr.rel (!%p13_p9) target bundleno = 2 (0x2), region = 120 }

</bundles_post_ra>
